<compile_context>
chip_gen: v7x
topology: tpu7x:2x2x1
jax: 0.10.0
libtpu: 0.0.40
codegen_flags: <defaults>
</compile_context>

<pallas_src>
import functools

import jax
import jax.numpy as jnp
from jax.experimental import pallas as pl
from jax.experimental.pallas import tpu as pltpu

_EPS = 1e-5
_LANES = 128
_SMALL_BYTES = 4 << 20          # img+tab combined -> single-launch fast path
_MAX_TILE_ROWS = 8192           # 8192 x 128 x f32 = 4 MiB per streamed block
_VMEM_LIMIT = 48 * 1024 * 1024  # fits v7x 64 MiB/TC with headroom; fine on v5e/v6e


def _pick_tile_rows(rows: int) -> int:
    """Largest multiple-of-8 row tile <= cap that divides `rows`; else whole thing."""
    cap = min(_MAX_TILE_ROWS, rows)
    for t in range(cap - cap % 8, 7, -8):
        if rows % t == 0:
            return t
    return rows


# --------------------------------------------------------------------------------------
# Fast path: whole problem in one launch (stats + affine + matmul + residual).
# --------------------------------------------------------------------------------------
def _small_fuse_kernel(img_ref, tab_ref, pp_ref, wt_ref, out_ref, *, inv_b):
    img = img_ref[...]
    tab = tab_ref[...]
    gamma_i = pp_ref[0:1, :]
    beta_i = pp_ref[1:2, :]
    gamma_t = pp_ref[2:3, :]
    beta_t = pp_ref[3:4, :]
    bv = pp_ref[4:5, :]

    mu_i = jnp.sum(img, axis=0, keepdims=True) * inv_b
    mu_t = jnp.sum(tab, axis=0, keepdims=True) * inv_b
    di = img - mu_i
    dt = tab - mu_t
    var_i = jnp.sum(di * di, axis=0, keepdims=True) * inv_b   # centered -> exact
    var_t = jnp.sum(dt * dt, axis=0, keepdims=True) * inv_b
    a_i = gamma_i * jax.lax.rsqrt(var_i + _EPS)
    a_t = gamma_t * jax.lax.rsqrt(var_t + _EPS)

    t = 0.5 * (di * a_i + beta_i + dt * a_t + beta_t)          # 0.5*(img_n + tab_n)
    out_ref[...] = (jnp.dot(t, wt_ref[...], preferred_element_type=jnp.float32)
                    + t + bv)


# --------------------------------------------------------------------------------------
# Pass 1 (tiled path): shifted-moment accumulation in VMEM scratch; at the last grid
# step fold the lane groups, compute the BN affine and the folded constant row, and
# emit the (8, L) coefficient block (no JAX epilogue).
# --------------------------------------------------------------------------------------
def _stats_kernel(img_ref, tab_ref, pp_ref, w_ref, coef_ref, acc_ref, *,
                  n_rows, groups, feat):
    i = pl.program_id(0)

    @pl.when(i == 0)
    def _init():
        acc_ref[...] = jnp.zeros_like(acc_ref)
        coef_ref[...] = jnp.zeros_like(coef_ref)
        acc_ref[4:5, :] = img_ref[0:1, :]      # per-lane-group shift (numerics)
        acc_ref[5:6, :] = tab_ref[0:1, :]

    sh_i = acc_ref[4:5, :]
    sh_t = acc_ref[5:6, :]
    di = img_ref[...] - sh_i
    dt = tab_ref[...] - sh_t
    upd = jnp.concatenate(
        [jnp.sum(di, axis=0, keepdims=True),
         jnp.sum(di * di, axis=0, keepdims=True),
         jnp.sum(dt, axis=0, keepdims=True),
         jnp.sum(dt * dt, axis=0, keepdims=True)], axis=0)     # (4, L), one stacked RMW
    acc_ref[0:4, :] += upd

    @pl.when(i == pl.num_programs(0) - 1)
    def _finalize():
        inv_n = 1.0 / n_rows                   # rows per lane group
        inv_b = 1.0 / (n_rows * groups)        # 1 / batch

        def fold(x):                           # (1, groups*feat) -> (1, feat)
            acc = x[:, 0:feat]
            for g in range(1, groups):
                acc = acc + x[:, g * feat:(g + 1) * feat]
            return acc

        def tile(x):                           # (1, feat) -> (1, groups*feat)
            if groups == 1:
                return x
            return jnp.concatenate([x] * groups, axis=1)

        def bn_affine(s_sum, sq_sum, shift, gamma, beta):
            m_g = shift + s_sum * inv_n                        # per-group means
            m2_g = sq_sum - s_sum * s_sum * inv_n              # per-group SS about mean
            mu = tile(fold(m_g) * (1.0 / groups))              # grand mean (tiled)
            d = m_g - mu
            var = tile((fold(m2_g) + n_rows * fold(d * d)) * inv_b)  # biased var
            a = gamma * jax.lax.rsqrt(var + _EPS)
            c = beta - mu * a
            return a, c

        a_i, c_i = bn_affine(acc_ref[0:1, :], acc_ref[1:2, :], sh_i,
                             pp_ref[0:1, :], pp_ref[1:2, :])
        a_t, c_t = bn_affine(acc_ref[2:3, :], acc_ref[3:4, :], sh_t,
                             pp_ref[2:3, :], pp_ref[3:4, :])

        k = 0.5 * (c_i + c_t)
        k8 = jnp.broadcast_to(k, (8, k.shape[1]))              # MXU-friendly tiny dot
        kw = jnp.dot(k8, w_ref[...], preferred_element_type=jnp.float32)
        coef_ref[0:1, :] = 0.5 * a_i                           # a'_img
        coef_ref[1:2, :] = 0.5 * a_t                           # a'_tab
        coef_ref[2:3, :] = kw[0:1, :] + k + pp_ref[4:5, :]     # const = k@W + k + bv


# --------------------------------------------------------------------------------------
# Pass 2 (tiled path): t = a'_img*img + a'_tab*tab ; out = t@W + t + const.
# --------------------------------------------------------------------------------------
def _fuse_kernel(img_ref, tab_ref, coef_ref, w_ref, out_ref):
    t = img_ref[...] * coef_ref[0:1, :] + tab_ref[...] * coef_ref[1:2, :]
    out_ref[...] = (jnp.dot(t, w_ref[...], preferred_element_type=jnp.float32)
                    + t + coef_ref[2:3, :])


@functools.partial(jax.jit, static_argnames=("num_heads",))
def simple_fuse(img, tab, params, num_heads=4):
    # num_heads is mathematically irrelevant: softmax over a single key is 1 per head.
    del num_heads
    B, D = img.shape
    f32 = jnp.float32
    img = img.astype(f32)
    tab = tab.astype(f32)

    wv_t = params["wv"].T.astype(f32)          # (D, D): x @ wv_t == x @ Wv^T
    bv = params["bv"].astype(f32)
    gamma_i = params["gamma_img"].astype(f32)
    beta_i = params["beta_img"].astype(f32)
    gamma_t = params["gamma_tab"].astype(f32)
    beta_t = params["beta_tab"].astype(f32)

    # ----------------------- small problems: one fused launch -----------------------
    if 2 * B * D * 4 <= _SMALL_BYTES and D * D * 4 <= _SMALL_BYTES:
        pp = jnp.concatenate(
            [jnp.stack([gamma_i, beta_i, gamma_t, beta_t, bv], axis=0),
             jnp.zeros((3, D), f32)], axis=0)                  # (8, D) packed params
        return pl.pallas_call(
            functools.partial(_small_fuse_kernel, inv_b=1.0 / B),
            out_shape=jax.ShapeDtypeStruct((B, D), f32),
            grid=(1,),
            in_specs=[pl.BlockSpec((B, D), lambda i: (0, 0)),
                      pl.BlockSpec((B, D), lambda i: (0, 0)),
                      pl.BlockSpec((8, D), lambda i: (0, 0)),
                      pl.BlockSpec((D, D), lambda i: (0, 0))],
            out_specs=pl.BlockSpec((B, D), lambda i: (0, 0)),
            compiler_params=pltpu.CompilerParams(
                dimension_semantics=("arbitrary",)),
        )(img, tab, pp, wv_t)

    # ------------------- large problems: two lane-dense tiled passes -----------------
    # Repack (B, D) -> (B/G, G*D) (metadata-only for contiguous f32) so vregs/stores are
    # 128-lane dense; the weight becomes block-diagonal kron(I_G, Wv^T).
    groups = 1
    if D < _LANES and _LANES % D == 0 and B % (_LANES // D) == 0:
        groups = _LANES // D
    L = groups * D
    rows = B // groups
    img_r = img.reshape(rows, L)
    tab_r = tab.reshape(rows, L)

    def tile_row(x):                            # (D,) -> (1, L)
        return jnp.tile(x.reshape(1, D), (1, groups))

    pp = jnp.concatenate([tile_row(gamma_i), tile_row(beta_i),
                          tile_row(gamma_t), tile_row(beta_t),
                          tile_row(bv), jnp.zeros((3, L), f32)], axis=0)   # (8, L)
    # Weight assumed to fit VMEM (realistic embedding dims); no K-dim tiling needed here.
    w_bd = jnp.kron(jnp.eye(groups, dtype=f32), wv_t) if groups > 1 else wv_t

    tile_r = _pick_tile_rows(rows)
    n_tiles = rows // tile_r

    io_spec = pl.BlockSpec((tile_r, L), lambda i: (i, 0))
    row_spec = pl.BlockSpec((8, L), lambda i: (0, 0))
    w_spec = pl.BlockSpec((L, L), lambda i: (0, 0))

    coef = pl.pallas_call(
        functools.partial(_stats_kernel, n_rows=rows, groups=groups, feat=D),
        out_shape=jax.ShapeDtypeStruct((8, L), f32),
        grid=(n_tiles,),
        in_specs=[io_spec, io_spec, row_spec, w_spec],
        out_specs=row_spec,
        scratch_shapes=[pltpu.VMEM((8, L), f32)],
        compiler_params=pltpu.CompilerParams(
            dimension_semantics=("arbitrary",),
            vmem_limit_bytes=_VMEM_LIMIT),
        cost_estimate=pl.CostEstimate(
            flops=8 * rows * L, transcendentals=2 * D,
            bytes_accessed=(2 * rows * L + 16 * L + L * L) * 4),
    )(img_r, tab_r, pp, w_bd)

    out_r = pl.pallas_call(
        _fuse_kernel,
        out_shape=jax.ShapeDtypeStruct((rows, L), f32),
        grid=(n_tiles,),
        in_specs=[io_spec, io_spec, row_spec, w_spec],
        out_specs=io_spec,
        compiler_params=pltpu.CompilerParams(
            dimension_semantics=("parallel",),
            vmem_limit_bytes=_VMEM_LIMIT),
        cost_estimate=pl.CostEstimate(
            flops=2 * rows * L * L + 4 * rows * L, transcendentals=0,
            bytes_accessed=(3 * rows * L + 8 * L + L * L) * 4),
    )(img_r, tab_r, coef, w_bd)
    return out_r.reshape(B, D)


# --------------------------------------------------------------------------------------
# Pure-JAX reference mirroring the PyTorch forward (full q/k/softmax path).
# --------------------------------------------------------------------------------------
def _reference(img, tab, params, num_heads=4):
    D = img.shape[1]
    head_dim = D // num_heads
    scale = head_dim ** (-0.5)

    def bn(x, g, b):
        mu = x.mean(axis=0, keepdims=True)
        var = ((x - mu) ** 2).mean(axis=0, keepdims=True)
        return (x - mu) / jnp.sqrt(var + _EPS) * g + b

    img_n = bn(img, params["gamma_img"], params["beta_img"])
    tab_n = bn(tab, params["gamma_tab"], params["beta_tab"])

    def cross_attn(query, keyval):  # (B, 1, D)
        q = query @ params["wq"].T + params["bq"]
        k = keyval @ params["wk"].T + params["bk"]
        v = keyval @ params["wv"].T + params["bv"]
        Bn = q.shape[0]
        q = q.reshape(Bn, 1, num_heads, head_dim).transpose(0, 2, 1, 3)
        k = k.reshape(Bn, 1, num_heads, head_dim).transpose(0, 2, 1, 3)
        v = v.reshape(Bn, 1, num_heads, head_dim).transpose(0, 2, 1, 3)
        attn = (q @ jnp.swapaxes(k, -2, -1)) * scale
        attn = jax.nn.softmax(attn, axis=-1)
        out = attn @ v
        out = out.transpose(0, 2, 1, 3).reshape(Bn, 1, D)
        return out + query

    out_img = cross_attn(img_n[:, None, :], tab_n[:, None, :])
    out_tab = cross_attn(tab_n[:, None, :], img_n[:, None, :])
    return jnp.concatenate([out_img, out_tab], axis=1).mean(axis=1)


if __name__ == "__main__":
    D, H = 32, 4
    key = jax.random.PRNGKey(0)
    keys = jax.random.split(key, 14)

    bound = 1.0 / (D ** 0.5)  # nn.Linear default uniform bound
    params = {
        "gamma_img": 1.0 + 0.1 * jax.random.normal(keys[2], (D,), jnp.float32),
        "beta_img": 0.1 * jax.random.normal(keys[3], (D,), jnp.float32),
        "gamma_tab": 1.0 + 0.1 * jax.random.normal(keys[4], (D,), jnp.float32),
        "beta_tab": 0.1 * jax.random.normal(keys[5], (D,), jnp.float32),
        "wq": jax.random.uniform(keys[6], (D, D), jnp.float32, -bound, bound),
        "bq": jax.random.uniform(keys[7], (D,), jnp.float32, -bound, bound),
        "wk": jax.random.uniform(keys[8], (D, D), jnp.float32, -bound, bound),
        "bk": jax.random.uniform(keys[9], (D,), jnp.float32, -bound, bound),
        "wv": jax.random.uniform(keys[10], (D, D), jnp.float32, -bound, bound),
        "bv": jax.random.uniform(keys[11], (D,), jnp.float32, -bound, bound),
    }

    # ---- small shape: exercises the single-launch fast path ----
    B_small = 8
    img_s = jax.random.normal(keys[0], (B_small, D), jnp.float32)
    tab_s = jax.random.normal(keys[1], (B_small, D), jnp.float32)
    out_s = jax.block_until_ready(simple_fuse(img_s, tab_s, params, num_heads=H))
    ref_s = _reference(img_s, tab_s, params, num_heads=H)
    assert out_s.shape == (B_small, D)
    err_s = float(jnp.max(jnp.abs(out_s - ref_s)))
    assert err_s < 2e-5, f"fast-path max abs err {err_s}"

    # ---- larger shape (nonzero means): exercises the tiled lane-dense two-pass path ----
    B_big = 65536
    img_b = 2.0 + jax.random.normal(keys[12], (B_big, D), jnp.float32)
    tab_b = -1.0 + jax.random.normal(keys[13], (B_big, D), jnp.float32)
    out_b = jax.block_until_ready(simple_fuse(img_b, tab_b, params, num_heads=H))
    ref_b = _reference(img_b, tab_b, params, num_heads=H)
    assert out_b.shape == (B_big, D)
    err_b = float(jnp.max(jnp.abs(out_b - ref_b)))
    assert err_b < 1e-3, f"tiled-path max abs err {err_b}"

    print("KERNEL_OK")
</pallas_src>

<mosaic_0001>
module attributes {stable_mosaic.version = 11 : i64} {
  func.func @_small_fuse_kernel(%arg0: i32, %arg1: memref<8x32xf32, #tpu.memory_space<vmem>>, %arg2: memref<8x32xf32, #tpu.memory_space<vmem>>, %arg3: memref<8x32xf32, #tpu.memory_space<vmem>>, %arg4: memref<32x32xf32, #tpu.memory_space<vmem>>, %arg5: memref<8x32xf32, #tpu.memory_space<vmem>>) attributes {dimension_semantics = [#tpu.dimension_semantics<arbitrary>], iteration_bounds = array<i64: 1>, scalar_prefetch = 0 : i64, scratch_operands = 0 : i64, tpu.core_type = #tpu.core_type<tc>, window_params = [{pipeline_mode = #tpu.pipeline_mode<synchronous>, transform_indices = @transform_0, window_bounds = array<i64: 8, 32>}, {pipeline_mode = #tpu.pipeline_mode<synchronous>, transform_indices = @transform_1, window_bounds = array<i64: 8, 32>}, {pipeline_mode = #tpu.pipeline_mode<synchronous>, transform_indices = @transform_2, window_bounds = array<i64: 8, 32>}, {pipeline_mode = #tpu.pipeline_mode<synchronous>, transform_indices = @transform_3, window_bounds = array<i64: 32, 32>}, {pipeline_mode = #tpu.pipeline_mode<synchronous>, transform_indices = @transform_4, window_bounds = array<i64: 8, 32>}]} {
    %c0 = arith.constant 0 : index
    %c0_0 = arith.constant 0 : index
    %0 = vector.load %arg1[%c0, %c0_0] : memref<8x32xf32, #tpu.memory_space<vmem>>, vector<8x32xf32>
    %c0_1 = arith.constant 0 : index
    %c0_2 = arith.constant 0 : index
    %1 = vector.load %arg2[%c0_1, %c0_2] : memref<8x32xf32, #tpu.memory_space<vmem>>, vector<8x32xf32>
    %c0_3 = arith.constant 0 : index
    %c0_4 = arith.constant 0 : index
    %2 = vector.load %arg3[%c0_3, %c0_4] : memref<8x32xf32, #tpu.memory_space<vmem>>, vector<1x32xf32>
    %c1 = arith.constant 1 : index
    %c0_5 = arith.constant 0 : index
    %3 = vector.load %arg3[%c1, %c0_5] : memref<8x32xf32, #tpu.memory_space<vmem>>, vector<1x32xf32>
    %c2 = arith.constant 2 : index
    %c0_6 = arith.constant 0 : index
    %4 = vector.load %arg3[%c2, %c0_6] : memref<8x32xf32, #tpu.memory_space<vmem>>, vector<1x32xf32>
    %c3 = arith.constant 3 : index
    %c0_7 = arith.constant 0 : index
    %5 = vector.load %arg3[%c3, %c0_7] : memref<8x32xf32, #tpu.memory_space<vmem>>, vector<1x32xf32>
    %c4 = arith.constant 4 : index
    %c0_8 = arith.constant 0 : index
    %6 = vector.load %arg3[%c4, %c0_8] : memref<8x32xf32, #tpu.memory_space<vmem>>, vector<1x32xf32>
    %cst = arith.constant dense<0.000000e+00> : vector<32xf32>
    %7 = vector.multi_reduction <add>, %0, %cst [0] : vector<8x32xf32> to vector<32xf32>
    %8 = vector.shape_cast %7 : vector<32xf32> to vector<1x32xf32>
    %cst_9 = arith.constant 1.250000e-01 : f32
    %9 = vector.broadcast %cst_9 : f32 to vector<1x32xf32>
    %10 = arith.mulf %8, %9 : vector<1x32xf32>
    %cst_10 = arith.constant dense<0.000000e+00> : vector<32xf32>
    %11 = vector.multi_reduction <add>, %1, %cst_10 [0] : vector<8x32xf32> to vector<32xf32>
    %12 = vector.shape_cast %11 : vector<32xf32> to vector<1x32xf32>
    %cst_11 = arith.constant 1.250000e-01 : f32
    %13 = vector.broadcast %cst_11 : f32 to vector<1x32xf32>
    %14 = arith.mulf %12, %13 : vector<1x32xf32>
    %15 = vector.broadcast %10 : vector<1x32xf32> to vector<8x32xf32>
    %16 = arith.subf %0, %15 : vector<8x32xf32>
    %17 = vector.broadcast %14 : vector<1x32xf32> to vector<8x32xf32>
    %18 = arith.subf %1, %17 : vector<8x32xf32>
    %19 = arith.mulf %16, %16 : vector<8x32xf32>
    %cst_12 = arith.constant dense<0.000000e+00> : vector<32xf32>
    %20 = vector.multi_reduction <add>, %19, %cst_12 [0] : vector<8x32xf32> to vector<32xf32>
    %21 = vector.shape_cast %20 : vector<32xf32> to vector<1x32xf32>
    %cst_13 = arith.constant 1.250000e-01 : f32
    %22 = vector.broadcast %cst_13 : f32 to vector<1x32xf32>
    %23 = arith.mulf %21, %22 : vector<1x32xf32>
    %24 = arith.mulf %18, %18 : vector<8x32xf32>
    %cst_14 = arith.constant dense<0.000000e+00> : vector<32xf32>
    %25 = vector.multi_reduction <add>, %24, %cst_14 [0] : vector<8x32xf32> to vector<32xf32>
    %26 = vector.shape_cast %25 : vector<32xf32> to vector<1x32xf32>
    %cst_15 = arith.constant 1.250000e-01 : f32
    %27 = vector.broadcast %cst_15 : f32 to vector<1x32xf32>
    %28 = arith.mulf %26, %27 : vector<1x32xf32>
    %cst_16 = arith.constant 9.99999974E-6 : f32
    %29 = vector.broadcast %cst_16 : f32 to vector<1x32xf32>
    %30 = arith.addf %23, %29 : vector<1x32xf32>
    %31 = math.rsqrt %30 : vector<1x32xf32>
    %32 = arith.mulf %2, %31 : vector<1x32xf32>
    %cst_17 = arith.constant 9.99999974E-6 : f32
    %33 = vector.broadcast %cst_17 : f32 to vector<1x32xf32>
    %34 = arith.addf %28, %33 : vector<1x32xf32>
    %35 = math.rsqrt %34 : vector<1x32xf32>
    %36 = arith.mulf %4, %35 : vector<1x32xf32>
    %37 = vector.broadcast %32 : vector<1x32xf32> to vector<8x32xf32>
    %38 = arith.mulf %16, %37 : vector<8x32xf32>
    %39 = vector.broadcast %3 : vector<1x32xf32> to vector<8x32xf32>
    %40 = arith.addf %38, %39 : vector<8x32xf32>
    %41 = vector.broadcast %36 : vector<1x32xf32> to vector<8x32xf32>
    %42 = arith.mulf %18, %41 : vector<8x32xf32>
    %43 = arith.addf %40, %42 : vector<8x32xf32>
    %44 = vector.broadcast %5 : vector<1x32xf32> to vector<8x32xf32>
    %45 = arith.addf %43, %44 : vector<8x32xf32>
    %cst_18 = arith.constant 5.000000e-01 : f32
    %46 = vector.broadcast %cst_18 : f32 to vector<8x32xf32>
    %47 = arith.mulf %46, %45 : vector<8x32xf32>
    %c0_19 = arith.constant 0 : index
    %c0_20 = arith.constant 0 : index
    %48 = vector.load %arg4[%c0_19, %c0_20] : memref<32x32xf32, #tpu.memory_space<vmem>>, vector<32x32xf32>
    %cst_21 = arith.constant dense<0.000000e+00> : vector<8x32xf32>
    %49 = tpu.matmul %47, %48, %cst_21 {dimension_numbers = #tpu.dot_dimension_numbers<[1], [0], [0], [1], [0, 0, 1, 1], [], []>} : vector<8x32xf32>, vector<32x32xf32>, vector<8x32xf32> -> vector<8x32xf32>
    %50 = arith.addf %49, %47 : vector<8x32xf32>
    %51 = vector.broadcast %6 : vector<1x32xf32> to vector<8x32xf32>
    %52 = arith.addf %50, %51 : vector<8x32xf32>
    %c0_22 = arith.constant 0 : index
    %c0_23 = arith.constant 0 : index
    %53 = vector.load %arg5[%c0_22, %c0_23] : memref<8x32xf32, #tpu.memory_space<vmem>>, vector<8x32xf32>
    tpu.vector_store %arg5[%c0_22, %c0_23], %52 {strides = array<i32>} : memref<8x32xf32, #tpu.memory_space<vmem>>, vector<8x32xf32>,
    return
  }
  func.func @transform_0(%arg0: i32) -> (i32, i32) {
    %c0_i32 = arith.constant 0 : i32
    %c0_i32_0 = arith.constant 0 : i32
    %c0_i32_1 = arith.constant 0 : i32
    return %c0_i32, %c0_i32_0 : i32, i32
  }
  func.func @transform_1(%arg0: i32) -> (i32, i32) {
    %c0_i32 = arith.constant 0 : i32
    %c0_i32_0 = arith.constant 0 : i32
    %c0_i32_1 = arith.constant 0 : i32
    return %c0_i32, %c0_i32_0 : i32, i32
  }
  func.func @transform_2(%arg0: i32) -> (i32, i32) {
    %c0_i32 = arith.constant 0 : i32
    %c0_i32_0 = arith.constant 0 : i32
    %c0_i32_1 = arith.constant 0 : i32
    return %c0_i32, %c0_i32_0 : i32, i32
  }
  func.func @transform_3(%arg0: i32) -> (i32, i32) {
    %c0_i32 = arith.constant 0 : i32
    %c0_i32_0 = arith.constant 0 : i32
    %c0_i32_1 = arith.constant 0 : i32
    return %c0_i32, %c0_i32_0 : i32, i32
  }
  func.func @transform_4(%arg0: i32) -> (i32, i32) {
    %c0_i32 = arith.constant 0 : i32
    %c0_i32_0 = arith.constant 0 : i32
    %c0_i32_1 = arith.constant 0 : i32
    return %c0_i32, %c0_i32_0 : i32, i32
  }
}

</mosaic_0001>

<bundles_post_ra>
// kernel: simple_fuse.1
= control target key start
LH: loop header
LB: loop body
LE: loop exit
PB: predicated region body
PF: predicated region fallthrough
CT: control target
= control target key end

     0   :  { %v245_v3 = vmov 0.0|0.0   ;;  %vm246_vm0 = vmmov 0   ;;  %v247_v6 = vmov 0.0   ;;  %vm25_vm1 = vcmask 261120   ;;  %s325_s0 = inlined_call_operand.vmem [shape: f32[8,32], index: 0, kind: input, shape index: {}]   ;;  %s326_s1 = inlined_call_operand.vmem [shape: f32[8,32], index: 1, kind: input, shape index: {}]   ;;  %s327_s2 = inlined_call_operand.vmem [shape: f32[8,32], index: 2, kind: input, shape index: {}]   ;;  %s328_s3 = inlined_call_operand.vmem [shape: f32[32,32], index: 3, kind: input, shape index: {}]   ;;  %s329_s4 = inlined_call_operand.hbm [shape: f32[8,32], index: 4, kind: output, shape index: {}]  }
   0x1   :  { %v90_v0 = vld [vmem:[%s328_s3] sm:$0xff]  ;;  %v91_v1 = vld [vmem:[%s328_s3 + $0x8] sm:$0xff]  ;;  %v92_v2 = vld [vmem:[%s328_s3 + $0x10] sm:$0xff]  ;;  %207 = vmatprep.subr.bf16.mxu0 %v245_v3  ;;  %204 = vmatprep.mubr.msk.f32.mxu0 %vm246_vm0, %v247_v6 }
   0x2   :  { %v208_v4 = vpack.c.bf16 %v91_v1, %v90_v0  ;;  %v93_v5 = vld [vmem:[%s328_s3 + $0x18] sm:$0xff]  ;;  %v18_v7 = vld [vmem:[%s325_s0] sm:$0xff] }
   0x3   :  { %v19_v8 = vld [vmem:[%s326_s1] sm:$0xff]  ;;  %v211_v9 = vpack.c.bf16 %v93_v5, %v92_v2  ;;  %v26_v10 = vsel %vm25_vm1, %v18_v7, 0.0 }
   0x4   :  { %209 = vmatpush3.bf16.msra.mxu0 %v208_v4  ;;  %v34_v11 = vsel %vm25_vm1, %v19_v8, 0.0  ;;  %v27_v12 = vrot.slane %v26_v10, 4 }
   0x5   :  { %210 = vmatprep.subr.bf16.mxu0 %v245_v3  ;;  %v35_v13 = vrot.slane %v34_v11, 4 }
   0x6   :  { %9 = vsyncpa [#allocation3], 0  ;;  %v28_v14 = vadd.f32 %v27_v12, %v26_v10  ;;  %v68_v48 = vlaneseq  ;;  %v20_v50 = vld [vmem:[%s327_s2] sm:$0x1]  ;;  %v22_v51 = vld [vmem:[%s327_s2 + $0x2] sm:$0x1] }
   0x7   :  { %v36_v15 = vadd.f32 %v35_v13, %v34_v11  ;;  %v187_v58 = vld [vmem:[%s327_s2 + $0x1] ss:$0 sm:$0xff]  ;;  %v188_v63 = vld [vmem:[%s327_s2 + $0x3] ss:$0 sm:$0xff]  ;;  %v190_v3 = vld [vmem:[%s327_s2 + $0x4] ss:$0 sm:$0xff] }
   0x8   :  { %212 = vmatpush3.bf16.msra.mxu0 %v211_v9  ;;  %v29_v16 = vrot.slane %v28_v14, 2  ;;  %v69_v49 = vshrl.u32 %v68_v48, 7  ;;  %s248_s8 = smov [#allocation2]  }
   0x9   :  { %v37_v17 = vrot.slane %v36_v15, 2  ;;  %s179_s9 = sshll.u32 %s248_s8, 4  ;;  %s180_s9 = int_to_ptr.vmem [resolvable:$true] %s179_s9 }
   0xa   :  { %v30_v18 = vadd.f32 %v29_v16, %v28_v14  ;;  %v70_v52 = vsub.s32 0, %v69_v49  ;;  %s221_s10 = scalar_lea.vmem %s180_s9, 128  ;;  %p226_p1 = scmp.lt.s32.totalorder %s180_s9, %s180_s9 }
   0xb   :  { %v38_v19 = vadd.f32 %v37_v17, %v36_v15  ;;  %p222_p0 = scmp.ne.s32.totalorder %s180_s9, %s221_s10  ;;  %p227_p2 = scmp.lt.s32.totalorder %s221_s10, %s221_s10 }
   0xc   :  { %v31_v20 = vrot.slane %v30_v18, 1 }
   0xd   :  { %v39_v21 = vrot.slane %v38_v19, 1  ;;  %p228_p3 = por %p227_p2, %p226_p1 }
   0xe   :  { %v32_v22 = vadd.f32 %v31_v20, %v30_v18 }
   0xf   :  { %v40_v23 = vadd.f32 %v39_v21, %v38_v19  ;;  %p229_p4 = pnand %p228_p3, %p222_p0 }
  0x10   :  { %v33_v24 = vmul.f32 0.125, %v32_v22 }
  0x11   :  { %v41_v25 = vmul.f32 0.125, %v40_v23 }
  0x12   :  { %v42_v26 = vsub.f32 %v18_v7, %v33_v24 }
  0x13   :  { %v43_v27 = vsub.f32 %v19_v8, %v41_v25 }
  0x14   :  { %v44_v28 = vmul.f32 %v42_v26, %v42_v26 }
  0x15   :  { %v53_v29 = vmul.f32 %v43_v27, %v43_v27 }
  0x16   :  { %v45_v30 = vsel %vm25_vm1, %v44_v28, 0.0 }
  0x17   :  { %v54_v31 = vsel %vm25_vm1, %v53_v29, 0.0  ;;  %v46_v32 = vrot.slane %v45_v30, 4 }
  0x18   :  { %v55_v33 = vrot.slane %v54_v31, 4 }
  0x19   :  { %v47_v34 = vadd.f32 %v46_v32, %v45_v30 }
  0x1a   :  { %v56_v35 = vadd.f32 %v55_v33, %v54_v31 }
  0x1b   :  { %v48_v36 = vrot.slane %v47_v34, 2 }
  0x1c   :  { %v57_v37 = vrot.slane %v56_v35, 2 }
  0x1d   :  { %v49_v38 = vadd.f32 %v48_v36, %v47_v34 }
  0x1e   :  { %v58_v39 = vadd.f32 %v57_v37, %v56_v35 }
  0x1f   :  { %v50_v40 = vrot.slane %v49_v38, 1 }
  0x20   :  { %v59_v41 = vrot.slane %v58_v39, 1 }
  0x21   :  { %v51_v42 = vadd.f32 %v50_v40, %v49_v38 }
  0x22   :  { %v60_v43 = vadd.f32 %v59_v41, %v58_v39 }
  0x23   :  { %v52_v44 = vmul.f32 0.125, %v51_v42 }
  0x24   :  { %v61_v45 = vmul.f32 0.125, %v60_v43 }
  0x25   :  { %v62_v46 = vadd.f32 1e-05, %v52_v44 }
  0x26   :  { %v65_v47 = vadd.f32 1e-05, %v61_v45 }
  0x27   :  { %217 = vrsqrt.f32 %v62_v46 }
  0x28   :  { %219 = vrsqrt.f32 %v65_v47 }
  0x31   :  { %v218_v53 = vpop.eup %217 }
  0x32   :  { %v220_v54 = vpop.eup %219  ;;  %v64_v55 = vmul.f32 %v218_v53, %v20_v50 }
  0x33   :  { %v67_v56 = vmul.f32 %v220_v54, %v22_v51 }
  0x34   :  { %v71_v57 = vrot.slane %v64_v55, %v70_v52 }
  0x35   :  { %v81_v59 = vrot.slane %v67_v56, %v70_v52 }
  0x36   :  { %v72_v60 = vmul.f32 %v71_v57, %v42_v26 }
  0x37   :  { %v82_v61 = vmul.f32 %v81_v59, %v43_v27 }
  0x38   :  { %v77_v62 = vadd.f32 %v187_v58, %v72_v60 }
  0x3a   :  { %v83_v0 = vadd.f32 %v82_v61, %v77_v62 }
  0x3c   :  { %v88_v1 = vadd.f32 %v188_v63, %v83_v0 }
  0x3e   :  { %v89_v2 = vmul.f32 0.5, %v88_v1 }
  0x40   :  { %205 = vmatmul.mubr.msk.f32.vlgmr.msra.gmra.mrb[0].mxu0 %vm25_vm1, %v89_v2 }
 0x113   :  { %v163_v4 = vpop.f32.mrb[0].mxu0 }
 0x114   :  { %v164_v5 = vadd.f32 %v163_v4, %v89_v2  ;;  %v206_v6 = vpop.f32.mrb[1].mxu0 }
 0x116   :  { %v171_v7 = vadd.f32 %v190_v3, %v164_v5 }
 0x118   :  { %172 = vst.msk [vmem:[#allocation2] sm:$0xff] %vm25_vm1, %v171_v7 }
 0x119   :  { %232 = shalt.err (!%p229_p4)
}
 0x11a   :  { %s233_s2 = scalar_lea.hbm %s329_s4, 128 }
 0x11b   :  { %p234_p5 = scmp.ne.s32.totalorder %s329_s4, %s233_s2  ;;  %p237_p6 = scmp.lt.u32.totalorder %s233_s2, %s329_s4 }
 0x11d   :  { %p239_p7 = pnand %p237_p6, %p234_p5 }
 0x11f   :  { %242 = shalt.err (!%p239_p7)
}
 0x120   :  { %182 = dma.vmem_to_hbm [thread:$0]  %s180_s9, 128, %s329_s4, [#allocation3]  }
 0x121   :  { %243 = dma.done.wait [#allocation3], 128  }
 0x122   :  { %244 = vsyncadd [#allocation3], 4294967168 }
 0x123   :  { %186 = vsyncpa [#allocation3], 1 }

</bundles_post_ra>
